<compile_context>
chip_gen: v7x
topology: tpu7x:2x2x1
jax: 0.10.0
libtpu: 0.0.40
codegen_flags: <defaults>
</compile_context>

<pallas_src>
import functools
import string

import jax
import jax.numpy as jnp
from jax.experimental import pallas as pl
from jax.experimental.pallas import tpu as pltpu


# -----------------------------------------------------------------------------
# Pallas kernel: one grid step == one character through 2 GRU layers + Linear.
# Hidden state is carried across grid steps in the h_out_ref block (constant
# index_map -> VMEM resident for the whole grid, single HBM writeback at the end).
# -----------------------------------------------------------------------------
def gru_rnn_kernel(
    gi0_ref,      # (1, 1, 3H)  precomputed layer-0 input projection (incl. b_ih0)
    h_init_ref,   # (L, H)      initial hidden state
    w_hh0_ref,    # (H, 3H)     layer-0 hidden weights, gates [r|z|n] on lanes
    b_hh0_ref,    # (1, 3H)
    w1_ref,       # (2H, 4H)    layer-1 fused [x|h] weights, lanes [rz | i_n | h_n]
    b1_ref,       # (1, 4H)
    w_lin_ref,    # (H, Opad)   linear head, pre-transposed + lane-padded to 128
    b_lin_ref,    # (1, Opad)
    out_ref,      # (1, 1, Opad) lane-dense per-step logits block
    h_out_ref,    # (L, H)       hidden-state carry / final hidden output
):
    t = pl.program_id(0)
    H = h_init_ref.shape[1]

    @pl.when(t == 0)
    def _init():
        h_out_ref[...] = h_init_ref[...]

    h0 = h_out_ref[0:1, :]
    h1 = h_out_ref[1:2, :]

    # ---- layer 0: x-side projection was hoisted out of the recurrence ----------
    gi0 = gi0_ref[0]                                                   # (1, 3H)
    gh0 = (jnp.dot(h0, w_hh0_ref[...], preferred_element_type=jnp.float32)
           + b_hh0_ref[...])                                           # (1, 3H)
    rz0 = jax.nn.sigmoid(gi0[:, 0:2 * H] + gh0[:, 0:2 * H])            # fused r/z
    r0 = rz0[:, 0:H]
    z0 = rz0[:, H:2 * H]
    n0 = jnp.tanh(gi0[:, 2 * H:3 * H] + r0 * gh0[:, 2 * H:3 * H])
    h0_new = (1.0 - z0) * n0 + z0 * h0

    # ---- layer 1: single fused [x|h] matmul, lanes [rz_sum | i_n | h_n] ---------
    xh1 = jnp.concatenate([h0_new, h1], axis=1)                        # (1, 2H)
    g1 = (jnp.dot(xh1, w1_ref[...], preferred_element_type=jnp.float32)
          + b1_ref[...])                                               # (1, 4H)
    rz1 = jax.nn.sigmoid(g1[:, 0:2 * H])                               # fused r/z
    r1 = rz1[:, 0:H]
    z1 = rz1[:, H:2 * H]
    n1 = jnp.tanh(g1[:, 2 * H:3 * H] + r1 * g1[:, 3 * H:4 * H])
    h1_new = (1.0 - z1) * n1 + z1 * h1

    # carry hidden state across grid steps (single full-tile VMEM store)
    h_out_ref[...] = jnp.concatenate([h0_new, h1_new], axis=0)

    # lane-dense (1, 128) linear head for this step
    logits = (jnp.dot(h1_new, w_lin_ref[...], preferred_element_type=jnp.float32)
              + b_lin_ref[...])
    out_ref[...] = logits.reshape(out_ref.shape)


# -----------------------------------------------------------------------------
# One-time weight preparation (hoisted out of the per-sequence path).
# -----------------------------------------------------------------------------
def prepare_kernel_params(params):
    f32 = jnp.float32
    H = params["w_hh_l0"].shape[1]
    O = params["w_lin"].shape[0]
    o_pad = ((O + 127) // 128) * 128

    # Layer 0: x-side projection is hoisted, so only the hidden side goes in-kernel.
    w_ih0_t = jnp.asarray(params["w_ih_l0"], f32).T                    # (E, 3H)
    b_ih0 = jnp.asarray(params["b_ih_l0"], f32).reshape(1, 3 * H)
    w_hh0 = jnp.asarray(params["w_hh_l0"], f32).T                      # (H, 3H)
    b_hh0 = jnp.asarray(params["b_hh_l0"], f32).reshape(1, 3 * H)

    # Layer 1: fused [x|h] weight (2H, 4H); output lanes [rz (x+h summed) | i_n | h_n].
    w_ih1 = jnp.asarray(params["w_ih_l1"], f32)                        # (3H, H)
    w_hh1 = jnp.asarray(params["w_hh_l1"], f32)                        # (3H, H)
    b_ih1 = jnp.asarray(params["b_ih_l1"], f32)
    b_hh1 = jnp.asarray(params["b_hh_l1"], f32)
    w1 = jnp.zeros((2 * H, 4 * H), f32)
    w1 = w1.at[:H, 0:2 * H].set(w_ih1[0:2 * H, :].T)                   # x-side r,z
    w1 = w1.at[H:, 0:2 * H].set(w_hh1[0:2 * H, :].T)                   # h-side r,z (summed in MXU)
    w1 = w1.at[:H, 2 * H:3 * H].set(w_ih1[2 * H:3 * H, :].T)           # i_n (x only)
    w1 = w1.at[H:, 3 * H:4 * H].set(w_hh1[2 * H:3 * H, :].T)           # h_n (h only)
    # r/z biases may be pre-summed; the n-gate biases must stay separate.
    b1 = jnp.concatenate([b_ih1[0:2 * H] + b_hh1[0:2 * H],
                          b_ih1[2 * H:3 * H],
                          b_hh1[2 * H:3 * H]]).reshape(1, 4 * H)

    # Lane-padded linear head.
    w_lin = jnp.zeros((H, o_pad), f32).at[:, :O].set(
        jnp.asarray(params["w_lin"], f32).T)
    b_lin = jnp.zeros((1, o_pad), f32).at[0, :O].set(
        jnp.asarray(params["b_lin"], f32))

    return {
        "embedding": jnp.asarray(params["embedding"], f32),
        "w_ih0_t": w_ih0_t, "b_ih0": b_ih0,
        "w_hh0": w_hh0, "b_hh0": b_hh0,
        "w1": w1, "b1": b1,
        "w_lin": w_lin, "b_lin": b_lin,
    }


# -----------------------------------------------------------------------------
# Sequence forward: exactly one pallas_call for the whole character sequence.
# (T=1 reproduces the original module's single-step forward exactly.)
# -----------------------------------------------------------------------------
def gru_rnn_forward_seq(char_indices, hidden_state, kp, *, output_size):
    T = char_indices.shape[0]
    L, _, H = hidden_state.shape
    assert L == 2, "kernel is specialized for no_of_hidden_layers=2"
    o_pad = kp["w_lin"].shape[1]
    three_h = kp["w_hh0"].shape[1]

    idx = char_indices.astype(jnp.int32)
    h0 = hidden_state.reshape(L, H).astype(jnp.float32)

    # Hoisted layer-0 input projection: embedding gather + one throughput-shaped
    # (T, E) @ (E, 3H) matmul, both outside the serial recurrence.
    x = jnp.take(kp["embedding"], idx, axis=0)                                  # (T, E)
    gi0 = (jnp.dot(x, kp["w_ih0_t"], preferred_element_type=jnp.float32,
                   precision=jax.lax.Precision.HIGHEST)
           + kp["b_ih0"])                                                       # (T, 3H)
    gi0 = gi0.reshape(T, 1, three_h)

    grid_spec = pltpu.PrefetchScalarGridSpec(
        num_scalar_prefetch=0,
        grid=(T,),
        in_specs=[
            pl.BlockSpec((1, 1, three_h), lambda t: (t, 0, 0)),     # per-step gi0
            pl.BlockSpec((L, H), lambda t: (0, 0)),                 # h_init (resident)
            pl.BlockSpec(kp["w_hh0"].shape, lambda t: (0, 0)),      # weights: constant
            pl.BlockSpec(kp["b_hh0"].shape, lambda t: (0, 0)),      #   index_maps =>
            pl.BlockSpec(kp["w1"].shape, lambda t: (0, 0)),         #   fetched once,
            pl.BlockSpec(kp["b1"].shape, lambda t: (0, 0)),         #   VMEM-resident
            pl.BlockSpec(kp["w_lin"].shape, lambda t: (0, 0)),
            pl.BlockSpec(kp["b_lin"].shape, lambda t: (0, 0)),
        ],
        out_specs=(
            pl.BlockSpec((1, 1, o_pad), lambda t: (t, 0, 0)),       # lane-dense logits
            pl.BlockSpec((L, H), lambda t: (0, 0)),                 # h carry/accumulator
        ),
    )

    out_pad, h_new = pl.pallas_call(
        gru_rnn_kernel,
        out_shape=(
            jax.ShapeDtypeStruct((T, 1, o_pad), jnp.float32),
            jax.ShapeDtypeStruct((L, H), jnp.float32),
        ),
        grid_spec=grid_spec,
        compiler_params=pltpu.CompilerParams(
            # sequential carry through the hidden state => "arbitrary"
            dimension_semantics=("arbitrary",),
            # tiny working set (<1 MiB); 32 MiB stays within v7x's 64 MiB VMEM too.
            vmem_limit_bytes=32 * 1024 * 1024,
        ),
    )(gi0, h0, kp["w_hh0"], kp["b_hh0"], kp["w1"], kp["b1"],
      kp["w_lin"], kp["b_lin"])

    # Per-step outputs (T, 1, O) and final hidden (L, 1, H), matching T applications
    # of the PyTorch module's forward.
    return out_pad[:, :, :output_size].reshape(T, 1, output_size), h_new.reshape(L, 1, H)


# -----------------------------------------------------------------------------
# Pure-JAX single-step reference of the original module (correctness check).
# -----------------------------------------------------------------------------
def gru_rnn_reference(char_idx, hidden_state, params):
    E = params["embedding"].shape[1]
    L, _, H = hidden_state.shape
    hp = jax.lax.Precision.HIGHEST
    x = params["embedding"][char_idx].reshape(1, E)
    hs = hidden_state.reshape(L, H)

    def cell(x, h, w_ih, w_hh, b_ih, b_hh):
        gi = jnp.dot(x, w_ih.T, precision=hp) + b_ih
        gh = jnp.dot(h, w_hh.T, precision=hp) + b_hh
        i_r, i_z, i_n = gi[:, :H], gi[:, H:2 * H], gi[:, 2 * H:]
        h_r, h_z, h_n = gh[:, :H], gh[:, H:2 * H], gh[:, 2 * H:]
        r = jax.nn.sigmoid(i_r + h_r)
        z = jax.nn.sigmoid(i_z + h_z)
        n = jnp.tanh(i_n + r * h_n)
        return (1.0 - z) * n + z * h

    h0 = cell(x, hs[0:1], params["w_ih_l0"], params["w_hh_l0"],
              params["b_ih_l0"], params["b_hh_l0"])
    h1 = cell(h0, hs[1:2], params["w_ih_l1"], params["w_hh_l1"],
              params["b_ih_l1"], params["b_hh_l1"])
    out = jnp.dot(h1, params["w_lin"].T, precision=hp) + params["b_lin"]
    return out.reshape(1, 1, -1), jnp.stack([h0, h1]).reshape(L, 1, H)


# -----------------------------------------------------------------------------
# Deterministic parameter construction (PyTorch-style uniform(-1/sqrt(H), 1/sqrt(H))).
# -----------------------------------------------------------------------------
def init_params(key, vocab, embedding_dim, hidden_size, output_size):
    ks = jax.random.split(key, 12)
    H, E, O = hidden_size, embedding_dim, output_size
    s = 1.0 / jnp.sqrt(jnp.float32(H))
    u = lambda k, shape: jax.random.uniform(k, shape, jnp.float32, -s, s)
    return {
        "embedding": jax.random.normal(ks[0], (vocab, E), jnp.float32),
        "w_ih_l0": u(ks[1], (3 * H, E)),
        "w_hh_l0": u(ks[2], (3 * H, H)),
        "b_ih_l0": u(ks[3], (3 * H,)),
        "b_hh_l0": u(ks[4], (3 * H,)),
        "w_ih_l1": u(ks[5], (3 * H, H)),
        "w_hh_l1": u(ks[6], (3 * H, H)),
        "b_ih_l1": u(ks[7], (3 * H,)),
        "b_hh_l1": u(ks[8], (3 * H,)),
        "w_lin": u(ks[9], (O, H)),
        "b_lin": u(ks[10], (O,)),
    }


if __name__ == "__main__":
    vocab = len(string.printable)       # 100
    embedding_dim = 32
    hidden_size = 32
    no_of_hidden_layers = 2
    output_size = vocab
    seq_len = 16

    key = jax.random.PRNGKey(0)
    k_params, k_hidden, k_seq = jax.random.split(key, 3)
    params = init_params(k_params, vocab, embedding_dim, hidden_size, output_size)
    kparams = prepare_kernel_params(params)     # hoisted, one-time weight prep

    char_indices = jax.random.randint(k_seq, (seq_len,), 0, vocab, dtype=jnp.int32)
    hidden_state = jax.random.normal(
        k_hidden, (no_of_hidden_layers, 1, hidden_size), jnp.float32)

    run = jax.jit(functools.partial(gru_rnn_forward_seq, output_size=output_size))
    out, h_new = run(char_indices, hidden_state, kparams)
    out = jax.block_until_ready(out)
    h_new = jax.block_until_ready(h_new)

    # Reference: apply the original module's single-step forward T times.
    ref_outs = []
    h_ref = hidden_state
    for i in range(seq_len):
        o, h_ref = gru_rnn_reference(char_indices[i], h_ref, params)
        ref_outs.append(o.reshape(1, output_size))
    ref_out = jnp.stack(ref_outs, axis=0)        # (T, 1, O)

    assert out.shape == (seq_len, 1, output_size)
    assert h_new.shape == (no_of_hidden_layers, 1, hidden_size)
    assert jnp.allclose(out, ref_out, rtol=1e-4, atol=1e-4)
    assert jnp.allclose(h_new, h_ref, rtol=1e-4, atol=1e-4)

    print("KERNEL_OK")
</pallas_src>

<mosaic_0001>
module attributes {stable_mosaic.version = 11 : i64} {
  func.func @gru_rnn_kernel(%arg0: i32, %arg1: memref<1x1x96xf32, #tpu.memory_space<vmem>>, %arg2: memref<2x32xf32, #tpu.memory_space<vmem>>, %arg3: memref<32x96xf32, #tpu.memory_space<vmem>>, %arg4: memref<1x96xf32, #tpu.memory_space<vmem>>, %arg5: memref<64x128xf32, #tpu.memory_space<vmem>>, %arg6: memref<1x128xf32, #tpu.memory_space<vmem>>, %arg7: memref<32x128xf32, #tpu.memory_space<vmem>>, %arg8: memref<1x128xf32, #tpu.memory_space<vmem>>, %arg9: memref<1x1x128xf32, #tpu.memory_space<vmem>>, %arg10: memref<2x32xf32, #tpu.memory_space<vmem>>) attributes {dimension_semantics = [#tpu.dimension_semantics<arbitrary>], iteration_bounds = array<i64: 16>, scalar_prefetch = 0 : i64, scratch_operands = 0 : i64, tpu.core_type = #tpu.core_type<tc>, window_params = [{transform_indices = @transform_0, window_bounds = array<i64: 1, 1, 96>}, {pipeline_mode = #tpu.pipeline_mode<synchronous>, transform_indices = @transform_1, window_bounds = array<i64: 2, 32>}, {pipeline_mode = #tpu.pipeline_mode<synchronous>, transform_indices = @transform_2, window_bounds = array<i64: 32, 96>}, {pipeline_mode = #tpu.pipeline_mode<synchronous>, transform_indices = @transform_3, window_bounds = array<i64: 1, 96>}, {pipeline_mode = #tpu.pipeline_mode<synchronous>, transform_indices = @transform_4, window_bounds = array<i64: 64, 128>}, {pipeline_mode = #tpu.pipeline_mode<synchronous>, transform_indices = @transform_5, window_bounds = array<i64: 1, 128>}, {pipeline_mode = #tpu.pipeline_mode<synchronous>, transform_indices = @transform_6, window_bounds = array<i64: 32, 128>}, {pipeline_mode = #tpu.pipeline_mode<synchronous>, transform_indices = @transform_7, window_bounds = array<i64: 1, 128>}, {transform_indices = @transform_8, window_bounds = array<i64: 1, 1, 128>}, {pipeline_mode = #tpu.pipeline_mode<synchronous>, transform_indices = @transform_9, window_bounds = array<i64: 2, 32>}]} {
    %c0_i32 = arith.constant 0 : i32
    %0 = arith.cmpi eq, %arg0, %c0_i32 : i32
    %1 = arith.extui %0 : i1 to i32
    %c0_i32_0 = arith.constant 0 : i32
    %2 = arith.cmpi ne, %1, %c0_i32_0 : i32
    scf.if %2 {
      %c0_29 = arith.constant 0 : index
      %c0_30 = arith.constant 0 : index
      %62 = vector.load %arg2[%c0_29, %c0_30] : memref<2x32xf32, #tpu.memory_space<vmem>>, vector<2x32xf32>
      %c0_31 = arith.constant 0 : index
      %c0_32 = arith.constant 0 : index
      %63 = vector.load %arg10[%c0_31, %c0_32] : memref<2x32xf32, #tpu.memory_space<vmem>>, vector<2x32xf32>
      tpu.vector_store %arg10[%c0_31, %c0_32], %62 {strides = array<i32>} : memref<2x32xf32, #tpu.memory_space<vmem>>, vector<2x32xf32>,
    } else {
    }
    %c0 = arith.constant 0 : index
    %c0_1 = arith.constant 0 : index
    %3 = vector.load %arg10[%c0, %c0_1] : memref<2x32xf32, #tpu.memory_space<vmem>>, vector<1x32xf32>
    %c1 = arith.constant 1 : index
    %c0_2 = arith.constant 0 : index
    %4 = vector.load %arg10[%c1, %c0_2] : memref<2x32xf32, #tpu.memory_space<vmem>>, vector<1x32xf32>
    %c0_3 = arith.constant 0 : index
    %c0_4 = arith.constant 0 : index
    %c0_5 = arith.constant 0 : index
    %5 = vector.load %arg1[%c0_3, %c0_4, %c0_5] : memref<1x1x96xf32, #tpu.memory_space<vmem>>, vector<1x1x96xf32>
    %6 = vector.shape_cast %5 : vector<1x1x96xf32> to vector<1x96xf32>
    %c0_6 = arith.constant 0 : index
    %c0_7 = arith.constant 0 : index
    %7 = vector.load %arg3[%c0_6, %c0_7] : memref<32x96xf32, #tpu.memory_space<vmem>>, vector<32x96xf32>
    %cst = arith.constant dense<0.000000e+00> : vector<1x96xf32>
    %8 = tpu.matmul %3, %7, %cst {dimension_numbers = #tpu.dot_dimension_numbers<[1], [0], [0], [1], [0, 0, 1, 1], [], []>} : vector<1x32xf32>, vector<32x96xf32>, vector<1x96xf32> -> vector<1x96xf32>
    %c0_8 = arith.constant 0 : index
    %c0_9 = arith.constant 0 : index
    %9 = vector.load %arg4[%c0_8, %c0_9] : memref<1x96xf32, #tpu.memory_space<vmem>>, vector<1x96xf32>
    %10 = arith.addf %8, %9 : vector<1x96xf32>
    %11 = vector.extract_strided_slice %6 {offsets = [0, 0], sizes = [1, 64], strides = [1, 1]} : vector<1x96xf32> to vector<1x64xf32>
    %12 = vector.extract_strided_slice %10 {offsets = [0, 0], sizes = [1, 64], strides = [1, 1]} : vector<1x96xf32> to vector<1x64xf32>
    %13 = arith.addf %11, %12 : vector<1x64xf32>
    %14 = arith.negf %13 : vector<1x64xf32>
    %15 = math.exp %14 : vector<1x64xf32>
    %cst_10 = arith.constant 1.000000e+00 : f32
    %16 = vector.broadcast %cst_10 : f32 to vector<1x64xf32>
    %17 = arith.addf %16, %15 : vector<1x64xf32>
    %18 = arith.divf %16, %17 : vector<1x64xf32>
    %19 = vector.extract_strided_slice %18 {offsets = [0, 0], sizes = [1, 32], strides = [1, 1]} : vector<1x64xf32> to vector<1x32xf32>
    %20 = vector.extract_strided_slice %18 {offsets = [0, 32], sizes = [1, 32], strides = [1, 1]} : vector<1x64xf32> to vector<1x32xf32>
    %21 = vector.extract_strided_slice %6 {offsets = [0, 64], sizes = [1, 32], strides = [1, 1]} : vector<1x96xf32> to vector<1x32xf32>
    %22 = vector.extract_strided_slice %10 {offsets = [0, 64], sizes = [1, 32], strides = [1, 1]} : vector<1x96xf32> to vector<1x32xf32>
    %23 = arith.mulf %19, %22 : vector<1x32xf32>
    %24 = arith.addf %21, %23 : vector<1x32xf32>
    %25 = math.tanh %24 : vector<1x32xf32>
    %cst_11 = arith.constant 1.000000e+00 : f32
    %26 = vector.broadcast %cst_11 : f32 to vector<1x32xf32>
    %27 = arith.subf %26, %20 : vector<1x32xf32>
    %28 = arith.mulf %27, %25 : vector<1x32xf32>
    %29 = arith.mulf %20, %3 : vector<1x32xf32>
    %30 = arith.addf %28, %29 : vector<1x32xf32>
    %31 = tpu.concatenate %30, %4 in 1 : vector<1x32xf32>, vector<1x32xf32> -> vector<1x64xf32>
    %c0_12 = arith.constant 0 : index
    %c0_13 = arith.constant 0 : index
    %32 = vector.load %arg5[%c0_12, %c0_13] : memref<64x128xf32, #tpu.memory_space<vmem>>, vector<64x128xf32>
    %cst_14 = arith.constant dense<0.000000e+00> : vector<1x128xf32>
    %33 = tpu.matmul %31, %32, %cst_14 {dimension_numbers = #tpu.dot_dimension_numbers<[1], [0], [0], [1], [0, 0, 1, 1], [], []>} : vector<1x64xf32>, vector<64x128xf32>, vector<1x128xf32> -> vector<1x128xf32>
    %c0_15 = arith.constant 0 : index
    %c0_16 = arith.constant 0 : index
    %34 = vector.load %arg6[%c0_15, %c0_16] : memref<1x128xf32, #tpu.memory_space<vmem>>, vector<1x128xf32>
    %35 = arith.addf %33, %34 : vector<1x128xf32>
    %36 = vector.extract_strided_slice %35 {offsets = [0, 0], sizes = [1, 64], strides = [1, 1]} : vector<1x128xf32> to vector<1x64xf32>
    %37 = arith.negf %36 : vector<1x64xf32>
    %38 = math.exp %37 : vector<1x64xf32>
    %cst_17 = arith.constant 1.000000e+00 : f32
    %39 = vector.broadcast %cst_17 : f32 to vector<1x64xf32>
    %40 = arith.addf %39, %38 : vector<1x64xf32>
    %41 = arith.divf %39, %40 : vector<1x64xf32>
    %42 = vector.extract_strided_slice %41 {offsets = [0, 0], sizes = [1, 32], strides = [1, 1]} : vector<1x64xf32> to vector<1x32xf32>
    %43 = vector.extract_strided_slice %41 {offsets = [0, 32], sizes = [1, 32], strides = [1, 1]} : vector<1x64xf32> to vector<1x32xf32>
    %44 = vector.extract_strided_slice %35 {offsets = [0, 64], sizes = [1, 32], strides = [1, 1]} : vector<1x128xf32> to vector<1x32xf32>
    %45 = vector.extract_strided_slice %35 {offsets = [0, 96], sizes = [1, 32], strides = [1, 1]} : vector<1x128xf32> to vector<1x32xf32>
    %46 = arith.mulf %42, %45 : vector<1x32xf32>
    %47 = arith.addf %44, %46 : vector<1x32xf32>
    %48 = math.tanh %47 : vector<1x32xf32>
    %cst_18 = arith.constant 1.000000e+00 : f32
    %49 = vector.broadcast %cst_18 : f32 to vector<1x32xf32>
    %50 = arith.subf %49, %43 : vector<1x32xf32>
    %51 = arith.mulf %50, %48 : vector<1x32xf32>
    %52 = arith.mulf %43, %4 : vector<1x32xf32>
    %53 = arith.addf %51, %52 : vector<1x32xf32>
    %54 = tpu.concatenate %30, %53 in 0 : vector<1x32xf32>, vector<1x32xf32> -> vector<2x32xf32>
    %c0_19 = arith.constant 0 : index
    %c0_20 = arith.constant 0 : index
    %55 = vector.load %arg10[%c0_19, %c0_20] : memref<2x32xf32, #tpu.memory_space<vmem>>, vector<2x32xf32>
    tpu.vector_store %arg10[%c0_19, %c0_20], %54 {strides = array<i32>} : memref<2x32xf32, #tpu.memory_space<vmem>>, vector<2x32xf32>,
    %c0_21 = arith.constant 0 : index
    %c0_22 = arith.constant 0 : index
    %56 = vector.load %arg7[%c0_21, %c0_22] : memref<32x128xf32, #tpu.memory_space<vmem>>, vector<32x128xf32>
    %cst_23 = arith.constant dense<0.000000e+00> : vector<1x128xf32>
    %57 = tpu.matmul %53, %56, %cst_23 {dimension_numbers = #tpu.dot_dimension_numbers<[1], [0], [0], [1], [0, 0, 1, 1], [], []>} : vector<1x32xf32>, vector<32x128xf32>, vector<1x128xf32> -> vector<1x128xf32>
    %c0_24 = arith.constant 0 : index
    %c0_25 = arith.constant 0 : index
    %58 = vector.load %arg8[%c0_24, %c0_25] : memref<1x128xf32, #tpu.memory_space<vmem>>, vector<1x128xf32>
    %59 = arith.addf %57, %58 : vector<1x128xf32>
    %60 = vector.shape_cast %59 : vector<1x128xf32> to vector<1x1x128xf32>
    %c0_26 = arith.constant 0 : index
    %c0_27 = arith.constant 0 : index
    %c0_28 = arith.constant 0 : index
    %61 = vector.load %arg9[%c0_26, %c0_27, %c0_28] : memref<1x1x128xf32, #tpu.memory_space<vmem>>, vector<1x1x128xf32>
    tpu.vector_store %arg9[%c0_26, %c0_27, %c0_28], %60 {strides = array<i32>} : memref<1x1x128xf32, #tpu.memory_space<vmem>>, vector<1x1x128xf32>,
    return
  }
  func.func @transform_0(%arg0: i32) -> (i32, i32, i32) {
    %c0_i32 = arith.constant 0 : i32
    %c0_i32_0 = arith.constant 0 : i32
    %c0_i32_1 = arith.constant 0 : i32
    return %arg0, %c0_i32, %c0_i32_0 : i32, i32, i32
  }
  func.func @transform_1(%arg0: i32) -> (i32, i32) {
    %c0_i32 = arith.constant 0 : i32
    %c0_i32_0 = arith.constant 0 : i32
    %c0_i32_1 = arith.constant 0 : i32
    return %c0_i32, %c0_i32_0 : i32, i32
  }
  func.func @transform_2(%arg0: i32) -> (i32, i32) {
    %c0_i32 = arith.constant 0 : i32
    %c0_i32_0 = arith.constant 0 : i32
    %c0_i32_1 = arith.constant 0 : i32
    return %c0_i32, %c0_i32_0 : i32, i32
  }
  func.func @transform_3(%arg0: i32) -> (i32, i32) {
    %c0_i32 = arith.constant 0 : i32
    %c0_i32_0 = arith.constant 0 : i32
    %c0_i32_1 = arith.constant 0 : i32
    return %c0_i32, %c0_i32_0 : i32, i32
  }
  func.func @transform_4(%arg0: i32) -> (i32, i32) {
    %c0_i32 = arith.constant 0 : i32
    %c0_i32_0 = arith.constant 0 : i32
    %c0_i32_1 = arith.constant 0 : i32
    return %c0_i32, %c0_i32_0 : i32, i32
  }
  func.func @transform_5(%arg0: i32) -> (i32, i32) {
    %c0_i32 = arith.constant 0 : i32
    %c0_i32_0 = arith.constant 0 : i32
    %c0_i32_1 = arith.constant 0 : i32
    return %c0_i32, %c0_i32_0 : i32, i32
  }
  func.func @transform_6(%arg0: i32) -> (i32, i32) {
    %c0_i32 = arith.constant 0 : i32
    %c0_i32_0 = arith.constant 0 : i32
    %c0_i32_1 = arith.constant 0 : i32
    return %c0_i32, %c0_i32_0 : i32, i32
  }
  func.func @transform_7(%arg0: i32) -> (i32, i32) {
    %c0_i32 = arith.constant 0 : i32
    %c0_i32_0 = arith.constant 0 : i32
    %c0_i32_1 = arith.constant 0 : i32
    return %c0_i32, %c0_i32_0 : i32, i32
  }
  func.func @transform_8(%arg0: i32) -> (i32, i32, i32) {
    %c0_i32 = arith.constant 0 : i32
    %c0_i32_0 = arith.constant 0 : i32
    %c0_i32_1 = arith.constant 0 : i32
    return %arg0, %c0_i32, %c0_i32_0 : i32, i32, i32
  }
  func.func @transform_9(%arg0: i32) -> (i32, i32) {
    %c0_i32 = arith.constant 0 : i32
    %c0_i32_0 = arith.constant 0 : i32
    %c0_i32_1 = arith.constant 0 : i32
    return %c0_i32, %c0_i32_0 : i32, i32
  }
}

</mosaic_0001>

<bundles_post_ra>
// kernel: gru_rnn_forward_seq.1
= control target key start
LH: loop header
LB: loop body
LE: loop exit
PB: predicated region body
PF: predicated region fallthrough
CT: control target
= control target key end

     0   :  { %15 = vsyncpa [#allocation3], 0  ;;  %s1308_s0 = inlined_call_operand.vmem [shape: f32[16,1,96], index: 0, kind: input, shape index: {}]   ;;  %s1309_s1 = inlined_call_operand.vmem [shape: f32[2,32], index: 1, kind: input, shape index: {}]   ;;  %s1310_s2 = inlined_call_operand.vmem [shape: f32[32,96], index: 2, kind: input, shape index: {}]   ;;  %s1311_s3 = inlined_call_operand.vmem [shape: f32[1,96], index: 3, kind: input, shape index: {}]   ;;  %s1312_s4 = inlined_call_operand.vmem [shape: f32[64,128], index: 4, kind: input, shape index: {}]   ;;  %s1313_s5 = inlined_call_operand.vmem [shape: f32[1,128], index: 5, kind: input, shape index: {}]   ;;  %s1314_s6 = inlined_call_operand.vmem [shape: f32[32,128], index: 6, kind: input, shape index: {}]   ;;  %s1315_s7 = inlined_call_operand.vmem [shape: f32[1,128], index: 7, kind: input, shape index: {}]   ;;  %s1316_s8 = inlined_call_operand.hbm [shape: f32[16,1,128], index: 8, kind: output, shape index: {0}]   ;;  %s1317_s9 = inlined_call_operand.hbm [shape: f32[2,32], index: 9, kind: output, shape index: {1}]  }
   0x1   :  { %17 = vsyncpa [#allocation3 + $0x1], 0 }
   0x2   :  { %18 = vsyncpa [#allocation5], 0  ;;  %s1085_s30 = smov 0   ;;  %s1087_s10 = smov 0  }
   0x3   :  { %s1089_s11 = smov 0   ;;  %s1091_s12 = smov 0  }
   0x4 LB: > { %s1106_s13 = sadd.s32 4294967295, %s1024_s12   ;;  %s768_s14 = sadd.s32 4294967294, %s1024_s12   ;;  %s1024_s12 = sphi %s1091_s12, %s1325_s12   ;;  %s1020_s11 = sphi %s1089_s11, %s1324_s11   ;;  %s1016_s10 = sphi %s1087_s10, %s1323_s10   ;;  %s1012_s30 = sphi %s1085_s30, %s1322_s30  }
   0x5   : > { %s1110_s15 = sadd.s32 1, %s1024_s12   ;;  %s204_s16 = sadd.s32 1, %s1020_s11 }
   0x6   : > { %s201_s17 = ssub.s32 %s1024_s12, %s1110_s15  ;;  %p214_p0 = scmp.ne.s32.totalorder %s1020_s11, %s1016_s10 }
   0x7   : > { %p202_p1 = scmp.eq.s32.totalorder %s201_s17, 0  ;;  %p215_p2 = scmp.eq.s32.totalorder %s1106_s13, 15 }
   0x8   : > { %p220_p3 = scmp.ne.s32.totalorder %s1016_s10, %s1012_s30  ;;  %p221_p4 = scmp.eq.s32.totalorder %s768_s14, 15 }
   0x9   : > { %s1121_s18 = scalar_select %p202_p1, %s1020_s11, %s204_s16  }
   0xa   : > { %p1125_p5 = por %p215_p2, %p214_p0  ;;  %p1129_p6 = por %p221_p4, %p220_p3 }
   0xb   : > { %p771_p7 = scmp.ge.s32.totalorder %s1024_s12, 1  ;;  %p287_p8 = scmp.lt.s32.totalorder %s1024_s12, 17 }
   0xd   : > { %p288_p9 = pnand %p771_p7, %p287_p8 }
   0xe   : > { %s1318_s21 = sand.u32 (!%p288_p9), 1, %s1016_s10   ;;  %p320_p10 = scmp.lt.s32.totalorder (!%p288_p9), %s1106_s13, 15 }
   0xf   : > { %291 = sbr.rel (%p288_p9) target bundleno = 1667 (0x683), region = 52  ;;  %s1146_s26 = scalar_lea.vmem (!%p288_p9), [#allocation2], %s1318_s21 }
  0x10   : > { %p772_p11 = scmp.ne.s32.totalorder (!%p288_p9), %s1106_s13, 0 }
  0x16   : > { %s1138_s22 = scalar_select %p320_p10, %s1106_s13, 15 }
  0x17   : > { %326 = sbr.rel (%p772_p11) target bundleno = 30 (0x1e), region = 56  ;;  %v327_v0 = vld [vmem:[%s1309_s1] sm:$0x3] (!%p772_p11)  ;;  %vm328_vm0 = vcmask (!%p772_p11), 254976  }
  0x18   : > { %s322_s25 = scalar_lea.vmem %s1308_s0, %s1138_s22  ;;  %329 = vst.msk [vmem:[#allocation4] sm:$0x3] (!%p772_p11), %vm328_vm0, %v327_v0 }
  0x1e PF: > { %v333_v1 = vld [vmem:[%s1310_s2] sm:$0xff]  ;;  %v334_v2 = vld [vmem:[%s1310_s2 + $0x8] sm:$0xff]  ;;  %v335_v3 = vld [vmem:[%s1310_s2 + $0x10] sm:$0xff]  ;;  %v1026_v4 = vmov 0.0|0.0   ;;  %vm1027_vm1 = vmmov 0   ;;  %v1028_v7 = vmov 0.0   ;;  %v423_v12 = vlaneseq }
  0x1f   : > { %843 = vmatprep.subr.bf16.mxu0 %v1026_v4  ;;  %v844_v5 = vpack.c.bf16 %v334_v2, %v333_v1  ;;  %v336_v6 = vld [vmem:[%s1310_s2 + $0x18] sm:$0xff]  ;;  %810 = vmatprep.mubr.msk.f32.mxu0 %vm1027_vm1, %v1028_v7  ;;  %v330_v9 = vld [vmem:[#allocation4] sm:$0x1]  ;;  %vm338_vm2 = vcmask 261120   ;;  %v1029_v10 = vmov 1966171168  }
  0x20   : > { %849 = vmatprep.subr.bf16.mxu1 %v1026_v4  ;;  %829 = vmatprep.mubr.msk.f32.mxu1 %vm1027_vm1, %v1028_v7  ;;  %v847_v8 = vpack.c.bf16 %v336_v6, %v335_v3  ;;  %v421_v11 = vunpack.c.l.s4 %v1029_v10  ;;  %v424_v14 = vshrl.u32 %v423_v12, 7  ;;  %v337_v15 = vld [vmem:[%s1311_s3] sm:$0x1]  ;;  %s1030_s16 = smov 64   ;;  %v483_v34 = vld [vmem:[%s1312_s4 + $0x8] sm:$0xff]  ;;  %v484_v35 = vld [vmem:[%s1312_s4 + $0x10] sm:$0xff] }
  0x21   : > { %845 = vmatpush3.bf16.msra.mxu0 %v844_v5  ;;  %v332_v22 = vld [vmem:[%s322_s25] sm:$0x1]  ;;  %v485_v37 = vld [vmem:[%s1312_s4 + $0x18] sm:$0xff]  ;;  %s1031_s23 = smov 96   ;;  %v487_v42 = vld [vmem:[%s1312_s4 + $0x28] sm:$0xff]  ;;  %s1032_s28 = smov 32  }
  0x22   : > { %846 = vmatprep.subr.bf16.mxu0 %v1026_v4  ;;  %v422_v13 = vunpack.c.0.s8 %v421_v11  ;;  %v482_v33 = vld [vmem:[%s1312_s4] sm:$0xff]  ;;  %v853_v40 = vpack.c.bf16 %v485_v37, %v484_v35  ;;  %v488_v45 = vld [vmem:[%s1312_s4 + $0x30] sm:$0xff]  ;;  %v489_v46 = vld [vmem:[%s1312_s4 + $0x38] sm:$0xff]  ;;  %v472_v53 = vsub.s32 0, %v424_v14  ;;  %vm491_vm3 = vcmask 523264  }
  0x23   : > { %v850_v36 = vpack.c.bf16 %v483_v34, %v482_v33  ;;  %v486_v41 = vld [vmem:[%s1312_s4 + $0x20] sm:$0xff]  ;;  %v859_v47 = vpack.c.bf16 %v489_v46, %v488_v45  ;;  %v603_v10 = vld [vmem:[%s1314_s6 + $0x10] sm:$0xff]  ;;  %v604_v12 = vld [vmem:[%s1314_s6 + $0x18] sm:$0xff]  ;;  %vm593_vm4 = vcmask 1040384   ;;  %vm599_vm5 = vcmask 254976  }
  0x24   : > { %v425_v16 = vsub.s32 %v422_v13, %v424_v14  ;;  %v856_v43 = vpack.c.bf16 %v487_v42, %v486_v41  ;;  %v331_v44 = vld [vmem:[#allocation4 + $0x1] sm:$0x1]  ;;  %v490_v59 = vld [vmem:[%s1313_s5] sm:$0x1]  ;;  %v865_v13 = vpack.c.bf16 %v604_v12, %v603_v10 }
  0x25   : > { %848 = vmatpush3.bf16.msra.mxu0 %v847_v8  ;;  %851 = vmatpush3.bf16.msra.mxu1 %v850_v36  ;;  %v601_v8 = vld [vmem:[%s1314_s6] sm:$0xff] }
  0x26   : > { %861 = vmatprep.subr.bf16.mxu0 %v1026_v4  ;;  %v456_v32 = vrot.slane %v330_v9, %v425_v16  ;;  %852 = vmatprep.subr.bf16.mxu1 %v1026_v4 }
  0x28   : > { %811 = vmatmul.mubr.msk.f32.vlgmr.msra.gmra.mrb[0].mxu0 %vm338_vm2, %v330_v9  ;;  %v463_v39 = vrot.slane %v456_v32, %v425_v16  ;;  %v602_v9 = vld [vmem:[%s1314_s6 + $0x8] sm:$0xff] }
  0x29   : > { %840 = vmatprep.mubr.msk.f32.mxu0 %vm1027_vm1, %v1028_v7  ;;  %854 = vmatpush3.bf16.msra.mxu1 %v853_v40  ;;  %v862_v11 = vpack.c.bf16 %v602_v9, %v601_v8 }
  0x2a   : > { %855 = vmatprep.subr.bf16.mxu1 %v1026_v4 }
  0x2b   : > { %863 = vmatpush3.bf16.msra.mxu0 %v862_v11 }
  0x2c   : > { %864 = vmatprep.subr.bf16.mxu0 %v1026_v4 }
  0x2d   : > { %857 = vmatpush3.bf16.msra.mxu1 %v856_v43 }
  0x2e   : > { %858 = vmatprep.subr.bf16.mxu1 %v1026_v4 }
  0x2f   : > { %866 = vmatpush3.bf16.msra.mxu0 %v865_v13 }
  0x31   : > { %860 = vmatpush3.bf16.msra.mxu1 %v859_v47 }
  0xfb   : > { %v408_v17 = vpop.f32.mrb[0].mxu0 }
  0xfc   : > { %v409_v18 = vadd.f32 %v408_v17, %v337_v15  ;;  %v812_v19 = vpop.f32.mrb[1].mxu0 }
  0xfe   : > { %v426_v20 = vrot.slane %v409_v18, %v425_v16  ;;  %v412_v23 = vadd.f32 %v409_v18, %v332_v22 }
 0x100   : > { %v433_v21 = vrot.slane %v426_v20, %v425_v16  ;;  %v774_v24 = vmul.f32 -1.442695, %v412_v23 }
 0x102   : > { %434 = vrot.lane.b32.xlu0 %v433_v21, %s1030_s16  ;;  %920 = vpow2.f32 %v774_v24 }
 0x10c   : > { %v921_v25 = vpop.eup %920 }
 0x10d   : > { %v416_v26 = vadd.f32 1.0, %v921_v25 }
 0x10f   : > { %922 = vrcp.f32 %v416_v26 }
 0x119   : > { %v923_v27 = vpop.eup %922 }
 0x11a   : > { %v444_v49 = vsub.f32 1.0, %v923_v27 }
 0x174   : > { %v435_v28 = vpop.permute.xlu0 %434 }
 0x175   : > { %v437_v29 = vmul.f32 %v923_v27, %v435_v28 }
 0x177   : > { %439 = vrot.lane.b32.xlu0 %v437_v29, %s1030_s16 }
 0x1e9   : > { %v440_v30 = vpop.permute.xlu0 %439 }
 0x1ea   : > { %v442_v31 = vadd.f32 %v440_v30, %v332_v22 }
 0x1ec   : > { %924 = vtanh.f32 %v442_v31 }
 0x1f6   : > { %v925_v38 = vpop.eup %924 }
 0x1f7   : > { %446 = vrot.lane.b32.xlu1 %v925_v38, %s1031_s23 }
 0x1fb   : > { %464 = vrot.lane.b32.xlu1 %v463_v39, %s1032_s28 }
 0x1ff   : > { %478 = vrot.lane.b32.xlu1 %v331_v44, %s1032_s28 }
 0x269   : > { %v447_v48 = vpop.permute.xlu1 %446 }
 0x26a   : > { %v449_v51 = vmul.f32 %v447_v48, %v444_v49 }
 0x26d   : > { %v465_v50 = vpop.permute.xlu1 %464 }
 0x26e   : > { %v467_v52 = vmul.f32 %v923_v27, %v465_v50 }
 0x270   : > { %v468_v54 = vadd.f32 %v467_v52, %v449_v51 }
 0x271   : > { %v479_v56 = vpop.permute.xlu1 %478 }
 0x272   : > { %v473_v55 = vrot.slane %v468_v54, %v472_v53 }
 0x274   : > { %474 = vrot.lane.b32.xlu0 %v473_v55, %s1031_s23 }
 0x2e6   : > { %v475_v57 = vpop.permute.xlu0 %474 }
 0x2e7   : > { %v481_v58 = vsel %vm338_vm2, %v475_v57, %v479_v56 }
 0x2e8   : > { %830 = vmatmul.mubr.msk.f32.vlgmr.msra.gmra.mrb[0].mxu1 %vm491_vm3, %v481_v58 }
 0x3bb   : > { %v561_v60 = vpop.f32.mrb[0].mxu1 }
 0x3bc   : > { %v562_v61 = vadd.f32 %v561_v60, %v490_v59  ;;  %v831_v62 = vpop.f32.mrb[1].mxu1 }
 0x3be   : > { %572 = vrot.lane.b32.xlu0 %v562_v61, %s1032_s28  ;;  %v776_v63 = vmul.f32 -1.442695, %v562_v61 }
 0x3c0   : > { %926 = vpow2.f32 %v776_v63 }
 0x3ca   : > { %v927_v0 = vpop.eup %926 }
 0x3cb   : > { %v568_v1 = vadd.f32 1.0, %v927_v0 }
 0x3cd   : > { %928 = vrcp.f32 %v568_v1 }
 0x3d7   : > { %v929_v2 = vpop.eup %928 }
 0x3d8   : > { %v582_v15 = vsub.f32 1.0, %v929_v2  ;;  %v588_v17 = vmul.f32 %v929_v2, %v479_v56 }
 0x430   : > { %v573_v3 = vpop.permute.xlu0 %572 }
 0x431   : > { %v575_v5 = vmul.f32 %v929_v2, %v573_v3 }
 0x433   : > { %577 = vrot.lane.b32.xlu1 %v575_v5, %s1030_s16  ;;  %s1033_s16 = smov [#allocation4]  }
 0x434   : > { %s705_s24 = sshll.u32 %s1033_s16, 4  ;;  %s706_s24 = int_to_ptr.vmem [resolvable:$true] %s705_s24 }
 0x435   : > { %s932_s27 = scalar_lea.vmem %s706_s24, 32  ;;  %p939_p1 = scmp.lt.s32.totalorder %s706_s24, %s706_s24 }
 0x436   : > { %p933_p12 = scmp.ne.s32.totalorder %s706_s24, %s932_s27  ;;  %p940_p3 = scmp.lt.s32.totalorder %s932_s27, %s932_s27 }
 0x438   : > { %p934_p13 = pnand %p933_p12, %p215_p2  ;;  %p941_p4 = por %p940_p3, %p939_p1 }
 0x43a   : > { %p935_p0 = pneg %p934_p13 }
 0x43c   : > { %p942_p7 = pnand %p941_p4, %p935_p0 }
 0x4a5   : > { %v578_v6 = vpop.permute.xlu1 %577 }
 0x4a6   : > { %v580_v7 = vadd.f32 %v578_v6, %v562_v61 }
 0x4a8   : > { %930 = vtanh.f32 %v580_v7 }
 0x4b2   : > { %v931_v14 = vpop.eup %930 }
 0x4b3   : > { %584 = vrot.lane.b32.xlu0 %v931_v14, %s1031_s23 }
 0x525   : > { %v585_v16 = vpop.permute.xlu0 %584 }
 0x526   : > { %v587_v18 = vmul.f32 %v585_v16, %v582_v15 }
 0x528   : > { %v589_v19 = vadd.f32 %v588_v17, %v587_v18 }
 0x52a   : > { %v591_v20 = vrot.slane %v589_v19, 7  ;;  %606 = vrot.lane.b32.xlu1 %v589_v19, %s1031_s23 }
 0x52c   : > { %v594_v21 = vsel %vm593_vm4, %v468_v54, %v591_v20 }
 0x52d   : > { %596 = vrot.lane.b32.xlu0 %v594_v21, %s1031_s23 }
 0x59c   : > { %v607_v22 = vpop.permute.xlu1 %606 }
 0x59d   : > { %841 = vmatmul.mubr.msk.f32.vlgmr.msra.gmra.mrb[2].mxu0 %vm338_vm2, %v607_v22 }
 0x59f   : > { %v597_v4 = vpop.permute.xlu0 %596 }
 0x5a0   : > { %600 = vst.msk [vmem:[#allocation4] sm:$0x3] %vm599_vm5, %v597_v4 }
 0x5a1   : > { %945 = shalt.err (!%p942_p7)
}
 0x5a2   : > { %s946_s25 = scalar_lea.hbm %s1317_s9, 32 }
 0x5a3   : > { %p947_p8 = scmp.ne.s32.totalorder %s1317_s9, %s946_s25  ;;  %p952_p11 = scmp.lt.u32.totalorder %s946_s25, %s1317_s9 }
 0x5a5   : > { %p948_p9 = pnand %p947_p8, %p215_p2 }
 0x5a7   : > { %p949_p10 = pneg %p948_p9 }
 0x5a9   : > { %p954_p12 = pnand %p952_p11, %p949_p10 }
 0x5ab   : > { %957 = shalt.err (!%p954_p12)
}
 0x5ac   : > { %869 = dma.vmem_to_hbm [thread:$0]  (%p215_p2), %s706_s24, 32, %s1317_s9, [#allocation5]   ;;  %v605_v23 = vld [vmem:[%s1315_s7] sm:$0x1] }
 0x5ad   : > { %s778_s22 = sshll.u32 %s1106_s13, 4  ;;  %s694_s29 = sshll.u32 %s1146_s26, 4  ;;  %s1261_s29 = int_to_ptr.vmem [resolvable:$true] %s694_s29 }
 0x5ae   : > { %s1259_s14 = scalar_lea.hbm %s1316_s8, %s778_s22  ;;  %s1321_s24 = sand.u32 1, %s1016_s10  }
 0x5af   : > { %s682_s17 = scalar_lea.sflag [#allocation3], %s1321_s24  ;;  %s958_s21 = scalar_lea.vmem %s1261_s29, 16 }
 0x5b0   : > { %p959_p13 = scmp.ne.s32.totalorder %s1261_s29, %s958_s21  ;;  %s1034_s16 = smov [#allocation2]  }
 0x5b1   : > { %s962_s27 = sshll.u32 %s1034_s16, 4  ;;  %s963_s27 = int_to_ptr.vmem [resolvable:$false] %s962_s27 }
 0x5b2   : > { %p960_p0 = pnand %p959_p13, %p1125_p5  ;;  %s964_s23 = scalar_lea.vmem %s963_s27, 32 }
 0x5b3   : > { %p965_p3 = scmp.lt.s32.totalorder %s1261_s29, %s963_s27  ;;  %p966_p4 = scmp.lt.s32.totalorder %s964_s23, %s958_s21 }
 0x5b4   : > { %p961_p1 = pneg %p960_p0 }
 0x5b5   : > { %p967_p7 = por %p966_p4, %p965_p3 }
 0x5b7   : > { %p968_p8 = pnand %p967_p7, %p961_p1 }
 0x670   : > { %v676_v24 = vpop.f32.mrb[2].mxu0 }
 0x671   : > { %v677_v25 = vadd.f32 %v676_v24, %v605_v23  ;;  %v842_v26 = vpop.f32.mrb[3].mxu0 }
 0x673   : > { %680 = vst [vmem:[%s1146_s26] sm:$0x1] %v677_v25 }
 0x674   : > { %971 = shalt.err (!%p968_p8)
}
 0x675   : > { %s972_s26 = scalar_lea.hbm %s1259_s14, 16  ;;  %s976_s28 = scalar_lea.hbm %s1316_s8, 256 }
 0x676   : > { %p973_p9 = scmp.ne.s32.totalorder %s1259_s14, %s972_s26  ;;  %p977_p12 = scmp.lt.u32.totalorder %s1259_s14, %s1316_s8 }
 0x677   : > { %p978_p13 = scmp.lt.u32.totalorder %s976_s28, %s972_s26  ;;  %p980_p1 = scmp.lt.u32.totalorder %s972_s26, %s1259_s14 }
 0x678   : > { %p974_p10 = pnand %p973_p9, %p1125_p5 }
 0x679   : > { %p979_p0 = por %p978_p13, %p977_p12 }
 0x67a   : > { %p975_p11 = pneg %p974_p10 }
 0x67b   : > { %p981_p3 = por %p980_p1, %p979_p0 }
 0x67d   : > { %p982_p4 = pnand %p981_p3, %p975_p11 }
 0x67f   : > { %985 = shalt.err (!%p982_p4)
}
 0x680   : > { %867 = dma.vmem_to_hbm [thread:$0]  (%p1125_p5), %s1261_s29, 16, %s1259_s14, %s682_s17  }
 0x681   : > { %1003 = dma.done.wait (%p215_p2), [#allocation5], 32  }
 0x682   : > { %1005 = vsyncadd (%p215_p2), [#allocation5], 4294967264 }
 0x683 PF: > { %p879_p7 = scmp.ge.s32.totalorder %s1024_s12, 2  ;;  %s721_s21 = sand.u32 1, %s1012_s30  }
 0x684   : > { %s722_s27 = scalar_lea.sflag [#allocation3], %s721_s21 }
 0x685   : > { %p874_p8 = pnand %p879_p7, %p1129_p6 }
 0x687   : > { %1007 = dma.done.wait (!%p874_p8), %s722_s27, 16  }
 0x688   : > { %1009 = vsyncadd (!%p874_p8), %s722_s27, 4294967280  ;;  %p21_p5 = scmp.ge.s32.totalorder %s1110_s15, 18   ;;  %s1322_s30 = smov %s1016_s10 }
 0x689   : > { %s1323_s10 = smov %s1020_s11  ;;  %s1324_s11 = smov %s1121_s18 }
 0x68a   : > { %s1325_s12 = smov %s1110_s15  ;;  %23 = sbr.rel (!%p21_p5) target bundleno = 4 (0x4), region = 99 }
 0x691   :  { %726 = vsyncpa [#allocation3], 1 }
 0x692   :  { %728 = vsyncpa [#allocation3 + $0x1], 1 }
 0x693   :  { %729 = vsyncpa [#allocation5], 1 }

</bundles_post_ra>
